<compile_context>
chip_gen: v7x
topology: tpu7x:2x2x1
jax: 0.10.0
libtpu: 0.0.40
codegen_flags: <defaults>
</compile_context>

<pallas_src>
import jax
import jax.numpy as jnp
from jax.experimental import pallas as pl
from jax.experimental.pallas import tpu as pltpu


def _mlp_head_kernel(x_ref, w1_ref, b1_ref, w2_ref, b2_ref, o_ref):
    # hidden = relu(x @ W1 + b1), accumulated in f32.
    h = jnp.dot(x_ref[...], w1_ref[...], preferred_element_type=jnp.float32)
    h = jnp.maximum(h + b1_ref[...].astype(jnp.float32), 0.0)
    # Feed the second MXU pass in the weights' dtype (bf16 fast path when the
    # caller requested it), still accumulating in f32.
    if w2_ref.dtype != jnp.float32:
        h = h.astype(w2_ref.dtype)
    out = jnp.dot(h, w2_ref[...], preferred_element_type=jnp.float32)
    out = out + b2_ref[...].astype(jnp.float32)
    o_ref[...] = out.astype(o_ref.dtype)


def _round_up(x, m):
    return ((x + m - 1) // m) * m


def _nbytes(shape, dtype):
    n = 1
    for s in shape:
        n *= int(s)
    return n * jnp.dtype(dtype).itemsize


def visit_prediction_head(x, w1, b1, w2, b2, *,
                          batch_tile=None, vocab_tile=None, mxu_dtype=None):
    """Fused MLP head: relu(x @ w1 + b1) @ w2 + b2.

    x:  [B, D_in]
    w1: [D_in, H]   b1: [1, H]
    w2: [H, V]      b2: [1, V]
    returns logits [B, V] in x.dtype
    """
    B, D_in = x.shape
    H = w1.shape[1]
    V = w2.shape[1]
    assert w1.shape[0] == D_in and b1.shape == (1, H)
    assert w2.shape == (H, V) and b2.shape == (1, V)
    out_dtype = x.dtype

    # Optional bf16 MXU operands (f32 accumulation kept inside the kernel).
    if mxu_dtype is not None:
        x = x.astype(mxu_dtype)
        w1 = w1.astype(mxu_dtype)
        w2 = w2.astype(mxu_dtype)

    # --- Tile selection -----------------------------------------------------
    sub = 16 if x.dtype == jnp.bfloat16 else 8          # sublane quantum
    tb = batch_tile if batch_tile is not None else min(_round_up(B, sub), 256)
    tb = _round_up(tb, sub)
    Bp = _round_up(B, tb)

    tv = vocab_tile if vocab_tile is not None else min(_round_up(V, 128), 2048)
    tv = _round_up(tv, 128)
    Vp = _round_up(V, tv)

    Hp = _round_up(H, 128)                               # lane-dense hidden

    # --- Zero padding (semantically neutral: relu(0)=0, zero rows of W2) ----
    if Bp != B:
        x = jnp.pad(x, ((0, Bp - B), (0, 0)))
    if Hp != H:
        w1 = jnp.pad(w1, ((0, 0), (0, Hp - H)))
        b1 = jnp.pad(b1, ((0, 0), (0, Hp - H)))
        w2 = jnp.pad(w2, ((0, Hp - H), (0, 0)))
    if Vp != V:
        w2 = jnp.pad(w2, ((0, 0), (0, Vp - V)))
        b2 = jnp.pad(b2, ((0, 0), (0, Vp - V)))

    n_vocab = Vp // tv
    n_batch = Bp // tb

    # --- Cost / VMEM budgeting ---------------------------------------------
    flops = 2 * Bp * D_in * Hp * n_vocab + 2 * Bp * Hp * Vp
    bytes_accessed = (_nbytes((Bp, D_in), x.dtype) * n_vocab +
                      _nbytes((D_in, Hp), w1.dtype) +
                      _nbytes((1, Hp), b1.dtype) +
                      _nbytes((Hp, Vp), w2.dtype) +
                      _nbytes((1, Vp), b2.dtype) +
                      _nbytes((Bp, Vp), out_dtype))
    cost = pl.CostEstimate(flops=flops, transcendentals=0,
                           bytes_accessed=bytes_accessed)

    # Double-buffered tiles (x, out, w2, b2) + resident weights (w1, b1).
    vmem_est = (2 * (_nbytes((tb, D_in), x.dtype) +
                     _nbytes((tb, tv), out_dtype) +
                     _nbytes((Hp, tv), w2.dtype) +
                     _nbytes((1, tv), b2.dtype)) +
                2 * (_nbytes((D_in, Hp), w1.dtype) +
                     _nbytes((1, Hp), b1.dtype)))
    vmem_limit = min(max(2 * vmem_est + (4 << 20), 32 << 20), 64 << 20)

    # --- Launch: vocab tiles OUTER, batch tiles INNER (W2 reuse) ------------
    out = pl.pallas_call(
        _mlp_head_kernel,
        out_shape=jax.ShapeDtypeStruct((Bp, Vp), out_dtype),
        grid_spec=pltpu.PrefetchScalarGridSpec(
            num_scalar_prefetch=0,
            grid=(n_vocab, n_batch),
            in_specs=[
                pl.BlockSpec((tb, D_in), lambda j, i: (i, 0)),   # x tile
                pl.BlockSpec((D_in, Hp), lambda j, i: (0, 0)),   # W1 (resident)
                pl.BlockSpec((1, Hp),    lambda j, i: (0, 0)),   # b1 (resident)
                pl.BlockSpec((Hp, tv),   lambda j, i: (0, j)),   # W2 vocab tile
                pl.BlockSpec((1, tv),    lambda j, i: (0, j)),   # b2 vocab tile
            ],
            out_specs=pl.BlockSpec((tb, tv), lambda j, i: (i, j)),
        ),
        compiler_params=pltpu.CompilerParams(
            dimension_semantics=("parallel", "parallel"),
            vmem_limit_bytes=int(vmem_limit)),
        cost_estimate=cost,
    )(x, w1, b1, w2, b2)

    if Bp != B or Vp != V:
        out = out[:B, :V]
    return out


def init_params(key, input_dim, hidden_dim, vocab_size, dtype=jnp.float32):
    """Deterministic parameter init mimicking nn.Linear (uniform +-1/sqrt(fan_in))."""
    k1, k2, k3, k4 = jax.random.split(key, 4)
    lim1 = 1.0 / (input_dim ** 0.5)
    lim2 = 1.0 / (hidden_dim ** 0.5)
    w1 = jax.random.uniform(k1, (input_dim, hidden_dim), dtype, -lim1, lim1)
    b1 = jax.random.uniform(k2, (1, hidden_dim), dtype, -lim1, lim1)
    w2 = jax.random.uniform(k3, (hidden_dim, vocab_size), dtype, -lim2, lim2)
    b2 = jax.random.uniform(k4, (1, vocab_size), dtype, -lim2, lim2)
    return w1, b1, w2, b2


if __name__ == "__main__":
    # Small shapes consistent with the module (CLS embedding -> vocab logits).
    # Deliberately non-aligned B / H / V and small tiles so the wrapper's
    # padding and the multi-step (vocab x batch) grid are both exercised.
    batch = 40
    input_dim = 32        # module default is 128; scaled down
    hidden_dim = 32       # mlp_hidden_dims = [32]
    vocab_size = 300

    key = jax.random.PRNGKey(0)
    kx, kp = jax.random.split(key)
    x = jax.random.normal(kx, (batch, input_dim), jnp.float32)
    w1, b1, w2, b2 = init_params(kp, input_dim, hidden_dim, vocab_size)

    logits = visit_prediction_head(x, w1, b1, w2, b2,
                                   batch_tile=8, vocab_tile=128)
    jax.block_until_ready(logits)

    # Pure-JAX reference check (full-precision matmuls).
    hid = jnp.maximum(jnp.dot(x, w1, precision="highest") + b1, 0.0)
    ref = jnp.dot(hid, w2, precision="highest") + b2
    assert logits.shape == (batch, vocab_size)
    assert jnp.allclose(logits, ref, atol=1e-4, rtol=1e-4)

    print("KERNEL_OK")
</pallas_src>

<mosaic_0001>
module attributes {stable_mosaic.version = 11 : i64} {
  func.func @_mlp_head_kernel(%arg0: i32, %arg1: i32, %arg2: memref<8x32xf32, #tpu.memory_space<vmem>>, %arg3: memref<32x128xf32, #tpu.memory_space<vmem>>, %arg4: memref<1x128xf32, #tpu.memory_space<vmem>>, %arg5: memref<128x128xf32, #tpu.memory_space<vmem>>, %arg6: memref<1x128xf32, #tpu.memory_space<vmem>>, %arg7: memref<8x128xf32, #tpu.memory_space<vmem>>) attributes {dimension_semantics = [#tpu.dimension_semantics<parallel>, #tpu.dimension_semantics<parallel>], iteration_bounds = array<i64: 3, 5>, scalar_prefetch = 0 : i64, scratch_operands = 0 : i64, tpu.core_type = #tpu.core_type<tc>, window_params = [{transform_indices = @transform_0, window_bounds = array<i64: 8, 32>}, {pipeline_mode = #tpu.pipeline_mode<synchronous>, transform_indices = @transform_1, window_bounds = array<i64: 32, 128>}, {pipeline_mode = #tpu.pipeline_mode<synchronous>, transform_indices = @transform_2, window_bounds = array<i64: 1, 128>}, {transform_indices = @transform_3, window_bounds = array<i64: 128, 128>}, {transform_indices = @transform_4, window_bounds = array<i64: 1, 128>}, {transform_indices = @transform_5, window_bounds = array<i64: 8, 128>}]} {
    %c0 = arith.constant 0 : index
    %c0_0 = arith.constant 0 : index
    %0 = vector.load %arg2[%c0, %c0_0] : memref<8x32xf32, #tpu.memory_space<vmem>>, vector<8x32xf32>
    %c0_1 = arith.constant 0 : index
    %c0_2 = arith.constant 0 : index
    %1 = vector.load %arg3[%c0_1, %c0_2] : memref<32x128xf32, #tpu.memory_space<vmem>>, vector<32x128xf32>
    %cst = arith.constant dense<0.000000e+00> : vector<8x128xf32>
    %2 = tpu.matmul %0, %1, %cst {dimension_numbers = #tpu.dot_dimension_numbers<[1], [0], [0], [1], [0, 0, 1, 1], [], []>} : vector<8x32xf32>, vector<32x128xf32>, vector<8x128xf32> -> vector<8x128xf32>
    %c0_3 = arith.constant 0 : index
    %c0_4 = arith.constant 0 : index
    %3 = vector.load %arg4[%c0_3, %c0_4] : memref<1x128xf32, #tpu.memory_space<vmem>>, vector<1x128xf32>
    %4 = vector.broadcast %3 : vector<1x128xf32> to vector<8x128xf32>
    %5 = arith.addf %2, %4 : vector<8x128xf32>
    %cst_5 = arith.constant 0.000000e+00 : f32
    %6 = vector.broadcast %cst_5 : f32 to vector<8x128xf32>
    %7 = arith.maximumf %5, %6 : vector<8x128xf32>
    %c0_6 = arith.constant 0 : index
    %c0_7 = arith.constant 0 : index
    %8 = vector.load %arg5[%c0_6, %c0_7] : memref<128x128xf32, #tpu.memory_space<vmem>>, vector<128x128xf32>
    %cst_8 = arith.constant dense<0.000000e+00> : vector<8x128xf32>
    %9 = tpu.matmul %7, %8, %cst_8 {dimension_numbers = #tpu.dot_dimension_numbers<[1], [0], [0], [1], [0, 0, 1, 1], [], []>} : vector<8x128xf32>, vector<128x128xf32>, vector<8x128xf32> -> vector<8x128xf32>
    %c0_9 = arith.constant 0 : index
    %c0_10 = arith.constant 0 : index
    %10 = vector.load %arg6[%c0_9, %c0_10] : memref<1x128xf32, #tpu.memory_space<vmem>>, vector<1x128xf32>
    %11 = vector.broadcast %10 : vector<1x128xf32> to vector<8x128xf32>
    %12 = arith.addf %9, %11 : vector<8x128xf32>
    %c0_11 = arith.constant 0 : index
    %c0_12 = arith.constant 0 : index
    %13 = vector.load %arg7[%c0_11, %c0_12] : memref<8x128xf32, #tpu.memory_space<vmem>>, vector<8x128xf32>
    tpu.vector_store %arg7[%c0_11, %c0_12], %12 {strides = array<i32>} : memref<8x128xf32, #tpu.memory_space<vmem>>, vector<8x128xf32>,
    return
  }
  func.func @transform_0(%arg0: i32, %arg1: i32) -> (i32, i32) {
    %c0_i32 = arith.constant 0 : i32
    %c0_i32_0 = arith.constant 0 : i32
    return %arg1, %c0_i32 : i32, i32
  }
  func.func @transform_1(%arg0: i32, %arg1: i32) -> (i32, i32) {
    %c0_i32 = arith.constant 0 : i32
    %c0_i32_0 = arith.constant 0 : i32
    %c0_i32_1 = arith.constant 0 : i32
    return %c0_i32, %c0_i32_0 : i32, i32
  }
  func.func @transform_2(%arg0: i32, %arg1: i32) -> (i32, i32) {
    %c0_i32 = arith.constant 0 : i32
    %c0_i32_0 = arith.constant 0 : i32
    %c0_i32_1 = arith.constant 0 : i32
    return %c0_i32, %c0_i32_0 : i32, i32
  }
  func.func @transform_3(%arg0: i32, %arg1: i32) -> (i32, i32) {
    %c0_i32 = arith.constant 0 : i32
    %c0_i32_0 = arith.constant 0 : i32
    return %c0_i32, %arg0 : i32, i32
  }
  func.func @transform_4(%arg0: i32, %arg1: i32) -> (i32, i32) {
    %c0_i32 = arith.constant 0 : i32
    %c0_i32_0 = arith.constant 0 : i32
    return %c0_i32, %arg0 : i32, i32
  }
  func.func @transform_5(%arg0: i32, %arg1: i32) -> (i32, i32) {
    %c0_i32 = arith.constant 0 : i32
    return %arg1, %arg0 : i32, i32
  }
}

</mosaic_0001>

<bundles_post_ra>
// kernel: tpu_custom_call.1
= control target key start
LH: loop header
LB: loop body
LE: loop exit
PB: predicated region body
PF: predicated region fallthrough
CT: control target
= control target key end

     0   :  { %s1264_s0 = inlined_call_operand.vmem [shape: f32[40,32], index: 0, kind: input, shape index: {}]   ;;  %s1265_s1 = inlined_call_operand.vmem [shape: f32[32,128], index: 1, kind: input, shape index: {}]   ;;  %s1266_s2 = inlined_call_operand.vmem [shape: f32[1,128], index: 2, kind: input, shape index: {}]   ;;  %s1267_s3 = inlined_call_operand.hbm [shape: f32[128,384], index: 3, kind: input, shape index: {}]   ;;  %s1268_s4 = inlined_call_operand.vmem [shape: f32[1,384], index: 4, kind: input, shape index: {}]   ;;  %s1269_s5 = inlined_call_operand.hbm [shape: f32[40,384], index: 5, kind: output, shape index: {}]  }
   0x1   :  { %1274 = sst [smem:[#allocation11_spill]] %s1264_s0 }
   0x2   :  { %1275 = sst [smem:[#allocation12_spill]] %s1265_s1 }
   0x3   :  { %10 = vsyncpa [#allocation3], 0 }
   0x4   :  { %12 = vsyncpa [#allocation3 + $0x1], 0 }
   0x5   :  { %13 = vsyncpa [#allocation4], 0 }
   0x6   :  { %15 = vsyncpa [#allocation4 + $0x1], 0  ;;  %s1004_s18 = smov 0   ;;  %s1006_s19 = smov 0  }
   0x7   :  { %s1008_s20 = smov 0   ;;  %s1010_s21 = smov 0  }
   0x8   :  { %s1012_s22 = smov 0   ;;  %s1014_s23 = smov 0  }
   0x9   :  { %s1016_s24 = smov 0   ;;  %s1018_s25 = smov 0  }
   0xa   :  { %s1020_s26 = smov 0   ;;  %s1022_s27 = smov 0  }
   0xb   :  { %s1024_s28 = smov 0  }
   0xc LB: > { %1276 = sst [smem:[#allocation8_spill]] %s960_s27  ;;  %s588_s29 = sadd.s32 4294967295, %s964_s28   ;;  %s964_s28 = sphi %s1024_s28, %s21_s28   ;;  %s960_s27 = sphi %s1022_s27, %s1290_s27   ;;  %s956_s26 = sphi %s1020_s26, %s1298_s26   ;;  %s952_s25 = sphi %s1018_s25, %s1288_s25   ;;  %s948_s24 = sphi %s1016_s24, %s1297_s24   ;;  %s944_s23 = sphi %s1014_s23, %s1296_s23   ;;  %s940_s22 = sphi %s1012_s22, %s1295_s22   ;;  %s936_s21 = sphi %s1010_s21, %s1294_s21   ;;  %s932_s20 = sphi %s1008_s20, %s1293_s20   ;;  %s928_s19 = sphi %s1006_s19, %s1292_s19   ;;  %s924_s18 = sphi %s1004_s18, %s1291_s18  }
   0xd   : > { %s589_s30 = sadd.s32 4294967294, %s964_s28   ;;  %s30_s6 = sadd.s32 1, %s956_s26 }
   0xe   : > { %s33_s7 = sadd.s32 1, %s960_s27  ;;  %p31_p0 = scmp.ge.s32.totalorder %s30_s6, 5 }
   0xf   : > { %s108_s8 = sadd.s32 1, %s944_s23  ;;  %p115_p1 = scmp.ne.s32.totalorder %s944_s23, %s940_s22 }
  0x10   : > { %p116_p2 = scmp.eq.s32.totalorder %s964_s28, 0  ;;  %s1300_s6 = smov (%p31_p0, %s30_s6), 0 }
  0x11   : > { %1277 = sst [smem:[#allocation9_spill]] %s1300_s6  ;;  %s1302_s7 = smov (!%p31_p0, %s33_s7), %s960_s27 }
  0x12   : > { %p1068_p3 = por %p116_p2, %p115_p1  ;;  %p121_p4 = scmp.ne.s32.totalorder %s940_s22, %s936_s21 }
  0x13   : > { %p35_p5 = scmp.ge.s32.totalorder %s1302_s7, 3  ;;  %p122_p6 = scmp.eq.s32.totalorder %s588_s29, 0 }
  0x14   : > { %s157_s10 = ssub.s32 %s956_s26, %s1300_s6  ;;  %s162_s11 = sadd.s32 1, %s932_s20 }
  0x15   : > { %s1304_s7 = smov (%p35_p5, %s1302_s7), 0  ;;  %p1078_p7 = por %p122_p6, %p121_p4 }
  0x16   : > { %1279 = sst [smem:[#allocation10_spill]] %s1304_s7  ;;  %p172_p8 = scmp.ne.s32.totalorder %s932_s20, %s928_s19 }
  0x17   : > { %s105_s13 = ssub.s32 %s960_s27, %s1304_s7  ;;  %p173_p9 = scmp.eq.s32.totalorder %s588_s29, 14 }
  0x18   : > { %p106_p10 = scmp.eq.s32.totalorder %s105_s13, 0  ;;  %s159_s14 = sor.u32 %s157_s10, %s105_s13 }
  0x19   : > { %p160_p11 = scmp.eq.s32.totalorder %s159_s14, 0  ;;  %p1086_p12 = por %p173_p9, %p172_p8 }
  0x1a   : > { %s1091_s16 = scalar_select %p106_p10, %s944_s23, %s108_s8  }
  0x1b   : > { %s1281_s15 = scalar_select %p1086_p12, 1, 0 }
  0x1c   : > { %s1094_s17 = scalar_select %p160_p11, %s932_s20, %s162_s11  }
  0x1d   : > { %p178_p13 = scmp.ne.s32.totalorder %s928_s19, %s924_s18  ;;  %p179_p0 = scmp.eq.s32.totalorder %s589_s30, 14 }
  0x1e   : > { %p716_p1 = scmp.lt.s32.totalorder %s964_s28, 15  ;;  %s212_s29 = sand.u32 1, %s944_s23  }
  0x1f   : > { %p1099_p2 = por %p179_p0, %p178_p13  ;;  %s592_s7 = sshll.u32 %s212_s29, 7 }
  0x20   : > { %s593_s10 = sshll.u32 %s960_s27, 7  ;;  %s216_s8 = scalar_lea.vmem [#allocation2], %s592_s7 }
  0x21   : > { %s1282_s21 = scalar_select %p1099_p2, 1, 0 }
  0x22   : > { %s1108_s6 = scalar_lea.hbm %s1267_s3, %s593_s10  ;;  %s222_s11 = sshll.u32 %s216_s8, 4  ;;  %s1110_s11 = int_to_ptr.vmem [resolvable:$true] %s222_s11 }
  0x23   : > { %p1114_p4 = pnand %p716_p1, %p1068_p3  ;;  %s1118_s27 = scalar_lea.sflag [#allocation3], %s212_s29 }
  0x24   : > { %s812_s13 = scalar_lea.hbm %s1108_s6, 2048  ;;  %s817_s9 = scalar_lea.hbm %s1267_s3, 6144 }
  0x25   : > { %p813_p5 = scmp.ne.s32.totalorder %s1108_s6, %s812_s13  ;;  %p814_p6 = pneg %p1114_p4 }
  0x26   : > { %p818_p3 = scmp.lt.u32.totalorder %s1108_s6, %s1267_s3  ;;  %p819_p10 = scmp.lt.u32.totalorder %s817_s9, %s812_s13 }
  0x27   : > { %p815_p8 = pnand %p814_p6, %p813_p5  ;;  %p821_p13 = scmp.lt.u32.totalorder %s812_s13, %s1108_s6 }
  0x28   : > { %p820_p11 = por %p819_p10, %p818_p3 }
  0x29   : > { %p816_p9 = pneg %p815_p8 }
  0x2a   : > { %p822_p0 = por %p821_p13, %p820_p11 }
  0x2c   : > { %p823_p1 = pnand %p822_p0, %p816_p9 }
  0x2e   : > { %826 = shalt.err (!%p823_p1)
}
  0x2f   : > { %s827_s29 = scalar_lea.vmem %s1110_s11, 2048  ;;  %s966_s7 = smov [#allocation2]  }
  0x30   : > { %p828_p5 = scmp.ne.s32.totalorder %s1110_s11, %s827_s29  ;;  %s832_s10 = sshll.u32 %s966_s7, 4  ;;  %s833_s10 = int_to_ptr.vmem [resolvable:$false] %s832_s10 }
  0x31   : > { %s834_s14 = scalar_lea.vmem %s833_s10, 4096  ;;  %p835_p12 = scmp.lt.s32.totalorder %s1110_s11, %s833_s10 }
  0x32   : > { %p830_p8 = pnand %p828_p5, %p814_p6  ;;  %p836_p3 = scmp.lt.s32.totalorder %s834_s14, %s827_s29 }
  0x34   : > { %p831_p2 = pneg %p830_p8  ;;  %p837_p10 = por %p836_p3, %p835_p12 }
  0x36   : > { %p838_p11 = pnand %p837_p10, %p831_p2 }
  0x38   : > { %841 = shalt.err (!%p838_p11)
}
  0x39   : > { %s967_s13 = smov 384   ;;  %s968_s9 = smov 128  }
  0x3a   : > { %s969_s8 = smov 8   ;;  %p594_p6 = scmp.ge.s32.totalorder %s964_s28, 1 }
  0x3b   : > { %711 = dma.hbm_to_vmem [thread:$0]  (!%p1114_p4), %s1108_s6, 2048, %s1110_s11, %s1118_s27, %s967_s13, %s968_s9, %s969_s8  }
  0x3c   : > { %p236_p9 = scmp.lt.s32.totalorder %s964_s28, 16 }
  0x3e   : > { %p237_p13 = pnand %p594_p6, %p236_p9 }
  0x3f   : > { %s242_s29 = sand.u32 (!%p237_p13), 1, %s940_s22  }
  0x40   : > { %240 = sbr.rel (%p237_p13) target bundleno = 532 (0x214), region = 40  ;;  %s595_s7 = sshll.u32 (!%p237_p13), %s242_s29, 7 }
  0x41   : > { %s243_s10 = scalar_lea.sflag (!%p237_p13), [#allocation3], %s242_s29  ;;  %s1149_s14 = scalar_lea.vmem (!%p237_p13), [#allocation2], %s595_s7 }
  0x47   : > { %915 = dma.done.wait (%p1078_p7), %s243_s10, 2048  }
  0x48   : > { %917 = vsyncadd (%p1078_p7), %s243_s10, 4294965248  ;;  %p280_p12 = scmp.lt.s32.totalorder %s948_s24, 4  ;;  %v970_v0 = vmov 0.0|0.0   ;;  %vm971_vm0 = vmmov 0   ;;  %v972_v1 = vmov 0.0   ;;  %s1284_s1 = sld [smem:[#allocation12_spill]] }
  0x49   : > { %673 = vmatprep.subr.bf16.mxu0 %v970_v0  ;;  %635 = vmatprep.mubr.msk.f32.mxu0 %vm971_vm0, %v972_v1  ;;  %v374_v7 = vld [vmem:[%s1149_s14] sm:$0xff]  ;;  %v375_v8 = vld [vmem:[%s1149_s14 + $0x8] sm:$0xff]  ;;  %v376_v9 = vld [vmem:[%s1149_s14 + $0x10] sm:$0xff]  ;;  %s1285_s0 = sld [smem:[#allocation11_spill]]  ;;  %vm299_vm1 = vcmask 261120   ;;  %p284_p7 = scmp.lt.s32.totalorder %s952_s25, 2 }
  0x4a   : > { %679 = vmatprep.subr.bf16.mxu1 %v970_v0  ;;  %670 = vmatprep.mubr.msk.f32.mxu1 %vm971_vm0, %v972_v1  ;;  %s281_s27 = scalar_select %p280_p12, %s948_s24, 4  ;;  %v377_v10 = vld [vmem:[%s1149_s14 + $0x18] sm:$0xff]  ;;  %v680_v12 = vpack.c.bf16 %v375_v8, %v374_v7  ;;  %v378_v14 = vld [vmem:[%s1149_s14 + $0x20] sm:$0xff]  ;;  %v379_v15 = vld [vmem:[%s1149_s14 + $0x28] sm:$0xff] }
  0x4b   : > { %v683_v13 = vpack.c.bf16 %v377_v10, %v376_v9  ;;  %v686_v17 = vpack.c.bf16 %v379_v15, %v378_v14  ;;  %v380_v18 = vld [vmem:[%s1149_s14 + $0x30] sm:$0xff]  ;;  %v381_v19 = vld [vmem:[%s1149_s14 + $0x38] sm:$0xff]  ;;  %v382_v21 = vld [vmem:[%s1149_s14 + $0x40] sm:$0xff]  ;;  %s277_s30 = sand.u32 1, %s928_s19   ;;  %s703_s8 = smul.u32 3, %s948_s24 }
  0x4c   : > { %s597_s7 = sshll.u32 %s281_s27, 3  ;;  %681 = vmatpush3.bf16.msra.mxu1 %v680_v12  ;;  %v689_v20 = vpack.c.bf16 %v381_v19, %v380_v18  ;;  %v383_v22 = vld [vmem:[%s1149_s14 + $0x48] sm:$0xff]  ;;  %v384_v24 = vld [vmem:[%s1149_s14 + $0x50] sm:$0xff]  ;;  %v385_v25 = vld [vmem:[%s1149_s14 + $0x58] sm:$0xff]  ;;  %s596_s9 = sshll.u32 %s277_s30, 3 }
  0x4d   : > { %682 = vmatprep.subr.bf16.mxu1 %v970_v0  ;;  %v692_v23 = vpack.c.bf16 %v383_v22, %v382_v21  ;;  %v695_v26 = vpack.c.bf16 %v385_v25, %v384_v24  ;;  %v386_v27 = vld [vmem:[%s1149_s14 + $0x60] sm:$0xff]  ;;  %v387_v28 = vld [vmem:[%s1149_s14 + $0x68] sm:$0xff]  ;;  %v388_v30 = vld [vmem:[%s1149_s14 + $0x70] sm:$0xff]  ;;  %s285_s13 = scalar_select %p284_p7, %s952_s25, 2 }
  0x4e   : > { %v288_v2 = vld [vmem:[%s1284_s1] sm:$0xff]  ;;  %v289_v3 = vld [vmem:[%s1284_s1 + $0x8] sm:$0xff]  ;;  %v290_v4 = vld [vmem:[%s1284_s1 + $0x10] sm:$0xff]  ;;  %v698_v29 = vpack.c.bf16 %v387_v28, %v386_v27  ;;  %s480_s10 = sadd.s32 %s952_s25, %s703_s8  ;;  %s469_s24 = scalar_lea.sflag [#allocation4], %s277_s30 }
  0x4f   : > { %v674_v5 = vpack.c.bf16 %v289_v3, %v288_v2  ;;  %v291_v6 = vld [vmem:[%s1284_s1 + $0x18] sm:$0xff]  ;;  %s283_s11 = scalar_lea.vmem %s1285_s0, %s597_s7  ;;  %v598_v33 = vld [vmem:[%s1266_s2] ss:$0 sm:$0xff]  ;;  %s602_s6 = sshll.u32 %s480_s10, 7 }
  0x50   : > { %v677_v11 = vpack.c.bf16 %v291_v6, %v290_v4  ;;  %v287_v16 = vld [vmem:[%s283_s11] sm:$0xff]  ;;  %684 = vmatpush3.bf16.msra.mxu1 %v683_v13  ;;  %v389_v31 = vld [vmem:[%s1149_s14 + $0x78] sm:$0xff]  ;;  %s286_s14 = scalar_lea.vmem %s1268_s4, %s285_s13  ;;  %s279_s11 = scalar_lea.vmem [#allocation5], %s596_s9 }
  0x51   : > { %675 = vmatpush3.bf16.msra.mxu0 %v674_v5  ;;  %685 = vmatprep.subr.bf16.mxu1 %v970_v0  ;;  %v701_v32 = vpack.c.bf16 %v389_v31, %v388_v30  ;;  %v600_v38 = vld [vmem:[%s286_s14] ss:$0 sm:$0xff]  ;;  %s484_s27 = sshll.u32 %s279_s11, 4  ;;  %s1202_s1 = scalar_lea.hbm %s1269_s5, %s602_s6  ;;  %s1204_s27 = int_to_ptr.vmem [resolvable:$true] %s484_s27 }
  0x52   : > { %676 = vmatprep.subr.bf16.mxu0 %v970_v0  ;;  %s842_s25 = scalar_lea.vmem %s1204_s27, 128  ;;  %p1286_p4 = scmp.ne.s32.totalorder %s1281_s15, 0 }
  0x53   : > { %p843_p2 = scmp.ne.s32.totalorder %s1204_s27, %s842_s25  ;;  %s973_s13 = smov [#allocation5]  }
  0x54   : > { %687 = vmatpush3.bf16.msra.mxu1 %v686_v17  ;;  %s846_s9 = sshll.u32 %s973_s13, 4  ;;  %s847_s9 = int_to_ptr.vmem [resolvable:$false] %s846_s9 }
  0x55   : > { %678 = vmatpush3.bf16.msra.mxu0 %v677_v11  ;;  %688 = vmatprep.subr.bf16.mxu1 %v970_v0  ;;  %p844_p0 = pnand %p843_p2, %p1286_p4  ;;  %s848_s8 = scalar_lea.vmem %s847_s9, 256 }
  0x56   : > { %p849_p5 = scmp.lt.s32.totalorder %s1204_s27, %s847_s9  ;;  %p850_p8 = scmp.lt.s32.totalorder %s848_s8, %s842_s25 }
  0x57   : > { %p845_p1 = pneg %p844_p0 }
  0x58   : > { %636 = vmatmul.mubr.msk.f32.vlgmr.msra.gmra.mrb[0].mxu0 %vm299_vm1, %v287_v16  ;;  %690 = vmatpush3.bf16.msra.mxu1 %v689_v20  ;;  %p851_p3 = por %p850_p8, %p849_p5 }
  0x59   : > { %691 = vmatprep.subr.bf16.mxu1 %v970_v0 }
  0x5a   : > { %p852_p10 = pnand %p851_p3, %p845_p1 }
  0x5c   : > { %693 = vmatpush3.bf16.msra.mxu1 %v692_v23 }
  0x5d   : > { %694 = vmatprep.subr.bf16.mxu1 %v970_v0 }
  0x60   : > { %696 = vmatpush3.bf16.msra.mxu1 %v695_v26 }
  0x61   : > { %697 = vmatprep.subr.bf16.mxu1 %v970_v0 }
  0x64   : > { %699 = vmatpush3.bf16.msra.mxu1 %v698_v29 }
  0x65   : > { %700 = vmatprep.subr.bf16.mxu1 %v970_v0 }
  0x68   : > { %702 = vmatpush3.bf16.msra.mxu1 %v701_v32 }
 0x12b   : > { %v369_v34 = vpop.f32.mrb[0].mxu0 }
 0x12c   : > { %v370_v35 = vadd.f32 %v598_v33, %v369_v34  ;;  %v637_v36 = vpop.f32.mrb[1].mxu0 }
 0x12e   : > { %v373_v37 = vmax.f32 %v370_v35, 0.0 }
 0x130   : > { %671 = vmatmul.mubr.f32.vlgmr.msra.gmra.mrb[0].mxu1 %v373_v37 }
 0x203   : > { %v463_v39 = vpop.f32.mrb[0].mxu1 }
 0x204   : > { %v464_v40 = vadd.f32 %v600_v38, %v463_v39  ;;  %v672_v41 = vpop.f32.mrb[1].mxu1 }
 0x206   : > { %467 = vst [vmem:[%s279_s11] sm:$0xff] %v464_v40 }
 0x207   : > { %855 = shalt.err (!%p852_p10)
}
 0x208   : > { %s856_s0 = scalar_lea.hbm %s1202_s1, 128  ;;  %s860_s7 = scalar_lea.hbm %s1269_s5, 1920 }
 0x209   : > { %p857_p11 = scmp.ne.s32.totalorder %s1202_s1, %s856_s0  ;;  %p861_p13 = scmp.lt.u32.totalorder %s1202_s1, %s1269_s5 }
 0x20a   : > { %p862_p12 = scmp.lt.u32.totalorder %s860_s7, %s856_s0  ;;  %p864_p2 = scmp.lt.u32.totalorder %s856_s0, %s1202_s1 }
 0x20b   : > { %p858_p6 = pnand %p857_p11, %p1286_p4 }
 0x20c   : > { %p863_p7 = por %p862_p12, %p861_p13 }
 0x20d   : > { %p859_p9 = pneg %p858_p6 }
 0x20e   : > { %p865_p0 = por %p864_p2, %p863_p7 }
 0x210   : > { %p866_p1 = pnand %p865_p0, %p859_p9 }
 0x212   : > { %869 = shalt.err (!%p866_p1)
}
 0x213   : > { %706 = dma.vmem_to_hbm [thread:$0]  (%p1286_p4), %s1204_s27, 128, %s1202_s1, %s469_s24  }
 0x214 PF: > { %p717_p5 = scmp.ge.s32.totalorder %s964_s28, 2  ;;  %s496_s6 = sand.u32 1, %s924_s18  }
 0x215   : > { %p1287_p8 = scmp.ne.s32.totalorder %s1282_s21, 0  ;;  %s497_s11 = scalar_lea.sflag [#allocation4], %s496_s6 }
 0x217   : > { %p713_p3 = pnand %p717_p5, %p1287_p8 }
 0x219   : > { %919 = dma.done.wait (!%p713_p3), %s497_s11, 128  }
 0x21a   : > { %921 = vsyncadd (!%p713_p3), %s497_s11, 4294967168  ;;  %s21_s28 = sadd.s32 1, %s964_s28   ;;  %s1288_s25 = sld [smem:[#allocation8_spill]] }
 0x21b   : > { %p18_p10 = scmp.ge.s32.totalorder %s21_s28, 17   ;;  %s1289_s1 = sld [smem:[#allocation9_spill]] }
 0x21c   : > { %s1290_s27 = sld [smem:[#allocation10_spill]]  ;;  %s1291_s18 = smov %s928_s19 }
 0x21d   : > { %s1292_s19 = smov %s932_s20  ;;  %s1293_s20 = smov %s1094_s17 }
 0x21e   : > { %s1294_s21 = smov %s940_s22  ;;  %s1295_s22 = smov %s944_s23 }
 0x21f   : > { %s1296_s23 = smov %s1091_s16  ;;  %s1297_s24 = smov %s956_s26 }
 0x220   :  { %20 = sbr.rel (!%p18_p10) target bundleno = 12 (0xc), region = 91 }
 0x221   : > { %s1298_s26 = smov %s1289_s1 }
 0x227   :  { %502 = vsyncpa [#allocation3], 1 }
 0x228   :  { %504 = vsyncpa [#allocation3 + $0x1], 1 }
 0x229   :  { %505 = vsyncpa [#allocation4], 1 }
 0x22a   :  { %507 = vsyncpa [#allocation4 + $0x1], 1 }

</bundles_post_ra>
